<compile_context>
chip_gen: v6e
topology: v6e:2x2x1
jax: 0.10.0
libtpu: 0.0.40
codegen_flags: <defaults>
</compile_context>

<pallas_src>
import jax
import jax.numpy as jnp
from jax import lax
from jax.experimental import pallas as pl
from jax.experimental.pallas import tpu as pltpu


_LANE = 128
_MXU_VOCAB_MAX = 2048          # padded-vocab ceiling for the resident one-hot path


def _round_up(x, m):
    return pl.cdiv(x, m) * m


def _sublane(dtype):
    # f32 -> 8, bf16 -> 16, int8/fp8 -> 32 (sublane packing).
    return {4: 8, 2: 16, 1: 32}.get(jnp.dtype(dtype).itemsize, 8)


def _vmem_budget_bytes():
    # ~75% of physical VMEM: ~48 MiB on v7x (64 MiB/TC), ~96 MiB on v5e/v6e (128 MiB).
    try:
        cap = int(pltpu.get_tpu_info().vmem_capacity_bytes)
    except Exception:
        cap = 64 * 1024 * 1024
    return (cap * 3) // 4


# ----------------------------------------------------------------------------
# Path 1: small vocab — resident table, one-hot contraction on the MXU.
#   ids_ref   : (tile, 1)       i32
#   table_ref : (v_pad, d_pad)  table dtype (VMEM resident, constant index_map)
#   out_ref   : (tile, d_pad)
# ----------------------------------------------------------------------------
def _embedding_onehot_kernel(ids_ref, table_ref, out_ref):
    tile = ids_ref.shape[0]
    v_pad = table_ref.shape[0]
    # Lane-dense one-hot over the padded vocab axis; contraction rides the MXU.
    onehot = (ids_ref[...] == lax.broadcasted_iota(jnp.int32, (tile, v_pad), 1))
    onehot = onehot.astype(table_ref.dtype)
    out_ref[...] = jnp.dot(
        onehot,
        table_ref[...],
        preferred_element_type=jnp.float32,
        precision=lax.Precision.HIGHEST,   # bit-exact row selection for f32 tables
    ).astype(out_ref.dtype)


# ----------------------------------------------------------------------------
# Path 2: DMA gather — ids scalar-prefetched to SMEM, table stays in HBM,
# per-row async copies into a double-buffered VMEM tile (next tile prefetched
# while the current tile is written out by the pipeline).
#   ids_smem  : (n_pad,)          i32 (scalar prefetch)
#   table_hbm : (V, d_pad)        memory_space=pl.ANY (HBM)
#   out_ref   : (tile, d_pad)     VMEM output block
#   buf       : (2, tile, d_pad)  VMEM scratch (double buffer)
#   sem       : DMA semaphores, shape (2,)
# ----------------------------------------------------------------------------
def _embedding_gather_kernel(ids_smem, table_hbm, out_ref, buf, sem):
    tile = out_ref.shape[0]
    step = pl.program_id(0)
    n_steps = pl.num_programs(0)

    def start_rows(s, slot):
        base = s * tile

        def body(i, carry):
            row = ids_smem[base + i]
            pltpu.make_async_copy(
                table_hbm.at[pl.ds(row, 1), :],
                buf.at[slot, pl.ds(i, 1), :],
                sem.at[slot],
            ).start()
            return carry

        lax.fori_loop(0, tile, body, 0)

    # Prime the pipeline on the first step.
    @pl.when(step == 0)
    def _():
        start_rows(0, 0)

    slot = lax.rem(step, 2)

    # Wait for this step's row copies (same byte count per copy -> per-row waits).
    def wait_body(i, carry):
        pltpu.make_async_copy(
            table_hbm.at[pl.ds(0, 1), :],
            buf.at[slot, pl.ds(i, 1), :],
            sem.at[slot],
        ).wait()
        return carry

    lax.fori_loop(0, tile, wait_body, 0)

    # Prefetch next tile's rows into the other slot; overlaps with the store
    # below and the pipeline's HBM writeback of this output block.
    @pl.when(step + 1 < n_steps)
    def _():
        start_rows(step + 1, 1 - slot)

    out_ref[...] = buf[slot]


# ----------------------------------------------------------------------------
# pallas_call wrappers for the two paths.
# ----------------------------------------------------------------------------
def _lookup_onehot(ids, table_p, *, grid, tile, v_pad, d_pad, n_pad, V, vmem_limit):
    table_pv = jnp.pad(table_p, ((0, v_pad - V), (0, 0)))
    ids2d = ids.reshape(n_pad, 1)
    itemsize = jnp.dtype(table_p.dtype).itemsize
    cost = pl.CostEstimate(
        flops=2 * n_pad * v_pad * d_pad,
        transcendentals=0,
        bytes_accessed=4 * n_pad + itemsize * (v_pad * d_pad + n_pad * d_pad),
    )
    return pl.pallas_call(
        _embedding_onehot_kernel,
        out_shape=jax.ShapeDtypeStruct((n_pad, d_pad), table_p.dtype),
        grid=grid,
        in_specs=[
            pl.BlockSpec((tile, 1), lambda i: (i, 0)),        # ids tile
            pl.BlockSpec((v_pad, d_pad), lambda i: (0, 0)),   # table, VMEM resident
        ],
        out_specs=pl.BlockSpec((tile, d_pad), lambda i: (i, 0)),
        compiler_params=pltpu.CompilerParams(
            dimension_semantics=("parallel",),
            vmem_limit_bytes=vmem_limit,
        ),
        cost_estimate=cost,
    )(ids2d, table_pv)


def _lookup_dma_gather(ids, table_p, *, grid, tile, d_pad, n_pad, vmem_limit):
    itemsize = jnp.dtype(table_p.dtype).itemsize
    # Memory-bound gather: flops=0, bytes = ids + gathered rows + output.
    cost = pl.CostEstimate(
        flops=0,
        transcendentals=0,
        bytes_accessed=4 * n_pad + 2 * itemsize * n_pad * d_pad,
    )
    grid_spec = pltpu.PrefetchScalarGridSpec(
        num_scalar_prefetch=1,                          # ids -> SMEM
        grid=grid,
        in_specs=[pl.BlockSpec(memory_space=pl.ANY)],   # table stays in HBM
        out_specs=pl.BlockSpec((tile, d_pad), lambda i, ids_ref: (i, 0)),
        scratch_shapes=[
            pltpu.VMEM((2, tile, d_pad), table_p.dtype),   # double-buffered rows
            pltpu.SemaphoreType.DMA((2,)),
        ],
    )
    return pl.pallas_call(
        _embedding_gather_kernel,
        out_shape=jax.ShapeDtypeStruct((n_pad, d_pad), table_p.dtype),
        grid_spec=grid_spec,
        compiler_params=pltpu.CompilerParams(
            dimension_semantics=("arbitrary",),   # cross-step carry via buf slots
            vmem_limit_bytes=vmem_limit,
        ),
        cost_estimate=cost,
    )(ids, table_p)


# ----------------------------------------------------------------------------
# Public wrapper: out[..., :] = table[inputs[...], :]   (nn.Embedding forward)
# ----------------------------------------------------------------------------
def word_embedding(inputs, table, *, token_tile=256):
    """inputs: int token ids (any shape); table: (V, D) embedding matrix."""
    orig_shape = inputs.shape
    V, D = table.shape
    dtype = table.dtype
    sub = _sublane(dtype)
    d_pad = int(_round_up(D, _LANE))     # lane-dense rows / unmasked output stores

    ids = inputs.reshape(-1).astype(jnp.int32)
    N = ids.shape[0]

    # Tiny-N fast path: shrink the token tile so a small lookup is one grid step.
    tile = int(max(sub, min(_round_up(token_tile, sub), _round_up(N, sub))))
    n_pad = int(_round_up(N, tile))
    ids = jnp.pad(ids, (0, n_pad - N))   # padded ids hit row 0 (the zero row)

    table_p = table if d_pad == D else jnp.pad(table, ((0, 0), (0, d_pad - D)))

    grid = (n_pad // tile,)
    budget = _vmem_budget_bytes()

    v_pad = int(_round_up(V, _LANE))
    itemsize = jnp.dtype(dtype).itemsize
    # Resident-path VMEM estimate, counting the pipeline's double buffering of
    # the table and output blocks plus the in-kernel one-hot intermediate.
    resident_bytes = (
        itemsize * (2 * v_pad * d_pad + 2 * tile * d_pad)   # table + out (2x each)
        + 4 * (2 * tile * _LANE)                            # ids tile, lane padded
        + 4 * tile * v_pad                                  # one-hot (f32-ish vregs)
    )
    use_mxu = (v_pad <= _MXU_VOCAB_MAX) and (resident_bytes * 3 // 2 <= budget)

    if use_mxu:
        vmem_limit = int(min(max(resident_bytes * 3 // 2, 16 << 20), budget))
        out = _lookup_onehot(ids, table_p, grid=grid, tile=tile, v_pad=v_pad,
                             d_pad=d_pad, n_pad=n_pad, V=V, vmem_limit=vmem_limit)
    else:
        out = _lookup_dma_gather(ids, table_p, grid=grid, tile=tile, d_pad=d_pad,
                                 n_pad=n_pad, vmem_limit=int(min(budget, 32 << 20)))

    return out[:N, :D].reshape(*orig_shape, D)


# ----------------------------------------------------------------------------
# Deterministic table construction mirroring the PyTorch module structure:
# row 0 is zeros (padding), rows 1..V are the "trained" word vectors.
# TODO(synk): FastText training itself is host-side (gensim) model construction,
# not a TPU forward-pass op; it is intentionally not implemented as a kernel.
# ----------------------------------------------------------------------------
def build_embedding_table(key, vocab_size, word_dim):
    vectors = jax.random.normal(key, (vocab_size, word_dim), jnp.float32) * 0.1
    zero = jnp.zeros((1, word_dim), jnp.float32)
    return jnp.concatenate([zero, vectors], axis=0)      # (vocab_size + 1, D)


if __name__ == "__main__":
    B, T = 2, 8
    key = jax.random.PRNGKey(0)
    k1, k2, k3, k4 = jax.random.split(key, 4)

    # --- config 1: small vocab, D = 128  -> resident one-hot / MXU path ------
    vocab_s, dim_s = 64, 128
    table_s = build_embedding_table(k1, vocab_s, dim_s)                  # (65, 128)
    ids_s = jax.random.randint(k2, (B, T), 0, vocab_s + 1, dtype=jnp.int32)
    ids_s = ids_s.at[1, 5:].set(0)            # some padding tokens -> zero row
    out_s = jax.block_until_ready(word_embedding(ids_s, table_s))
    ref_s = jnp.take(table_s, ids_s, axis=0)
    assert out_s.shape == (B, T, dim_s)
    assert bool(jnp.all(jnp.isfinite(out_s)))
    assert bool(jnp.allclose(out_s, ref_s, atol=0.0, rtol=0.0))

    # --- config 2: larger vocab, FastText-like D = 300 -> DMA-gather path ----
    vocab_l, dim_l = 2048, 300
    table_l = build_embedding_table(k3, vocab_l, dim_l)                  # (2049, 300)
    ids_l = jax.random.randint(k4, (B, T), 0, vocab_l + 1, dtype=jnp.int32)
    ids_l = ids_l.at[0, 0].set(0)
    out_l = jax.block_until_ready(word_embedding(ids_l, table_l))
    ref_l = jnp.take(table_l, ids_l, axis=0)
    assert out_l.shape == (B, T, dim_l)
    assert bool(jnp.all(jnp.isfinite(out_l)))
    assert bool(jnp.allclose(out_l, ref_l, atol=0.0, rtol=0.0))

    print("KERNEL_OK")
</pallas_src>

<mosaic_0001>
module attributes {stable_mosaic.version = 11 : i64} {
  func.func @_embedding_onehot_kernel(%arg0: i32, %arg1: memref<16x1xi32, #tpu.memory_space<vmem>>, %arg2: memref<128x128xf32, #tpu.memory_space<vmem>>, %arg3: memref<16x128xf32, #tpu.memory_space<vmem>>) attributes {dimension_semantics = [#tpu.dimension_semantics<parallel>], iteration_bounds = array<i64: 1>, scalar_prefetch = 0 : i64, scratch_operands = 0 : i64, tpu.core_type = #tpu.core_type<tc>, window_params = [{transform_indices = @transform_0, window_bounds = array<i64: 16, 1>}, {pipeline_mode = #tpu.pipeline_mode<synchronous>, transform_indices = @transform_1, window_bounds = array<i64: 128, 128>}, {transform_indices = @transform_2, window_bounds = array<i64: 16, 128>}]} {
    %c0 = arith.constant 0 : index
    %c0_0 = arith.constant 0 : index
    %0 = vector.load %arg1[%c0, %c0_0] : memref<16x1xi32, #tpu.memory_space<vmem>>, vector<16x1xi32>
    %1 = tpu.iota {dimensions = array<i32: 1>} : vector<16x128xi32>
    %2 = vector.broadcast %0 : vector<16x1xi32> to vector<16x128xi32>
    %3 = arith.cmpi eq, %2, %1 : vector<16x128xi32>
    %4 = arith.extui %3 : vector<16x128xi1> to vector<16x128xi32>
    %5 = arith.sitofp %4 : vector<16x128xi32> to vector<16x128xf32>
    %c0_1 = arith.constant 0 : index
    %c0_2 = arith.constant 0 : index
    %6 = vector.load %arg2[%c0_1, %c0_2] : memref<128x128xf32, #tpu.memory_space<vmem>>, vector<128x128xf32>
    %cst = arith.constant dense<0.000000e+00> : vector<16x128xf32>
    %7 = tpu.matmul %5, %6, %cst {dimension_numbers = #tpu.dot_dimension_numbers<[1], [0], [0], [1], [0, 0, 1, 1], [], []>, precision = #tpu.contract_precision<fp32>} : vector<16x128xf32>, vector<128x128xf32>, vector<16x128xf32> -> vector<16x128xf32>
    %c0_3 = arith.constant 0 : index
    %c0_4 = arith.constant 0 : index
    %8 = vector.load %arg3[%c0_3, %c0_4] : memref<16x128xf32, #tpu.memory_space<vmem>>, vector<16x128xf32>
    tpu.vector_store %arg3[%c0_3, %c0_4], %7 {strides = array<i32>} : memref<16x128xf32, #tpu.memory_space<vmem>>, vector<16x128xf32>,
    return
  }
  func.func @transform_0(%arg0: i32) -> (i32, i32) {
    %c0_i32 = arith.constant 0 : i32
    %c0_i32_0 = arith.constant 0 : i32
    return %arg0, %c0_i32 : i32, i32
  }
  func.func @transform_1(%arg0: i32) -> (i32, i32) {
    %c0_i32 = arith.constant 0 : i32
    %c0_i32_0 = arith.constant 0 : i32
    %c0_i32_1 = arith.constant 0 : i32
    return %c0_i32, %c0_i32_0 : i32, i32
  }
  func.func @transform_2(%arg0: i32) -> (i32, i32) {
    %c0_i32 = arith.constant 0 : i32
    %c0_i32_0 = arith.constant 0 : i32
    return %arg0, %c0_i32 : i32, i32
  }
}

</mosaic_0001>

<bundles_post_ra>
// kernel: tpu_custom_call.1
= control target key start
LH: loop header
LB: loop body
LE: loop exit
PB: predicated region body
PF: predicated region fallthrough
CT: control target
= control target key end

     0   :  { %7 = vsyncpa [#allocation3], 0  ;;  %s1544_s0 = inlined_call_operand.vmem [shape: s32[16,1], index: 0, kind: input, shape index: {}]   ;;  %s1545_s1 = inlined_call_operand.hbm [shape: f32[128,128], index: 1, kind: input, shape index: {}]   ;;  %s1546_s2 = inlined_call_operand.hbm [shape: f32[16,128], index: 2, kind: output, shape index: {}]  }
   0x1   :  { %8 = vsyncpa [#allocation4], 0  ;;  %s1139_s9 = smov [#allocation2]  }
   0x2   :  { %s16_s10 = sshll.u32 %s1139_s9, 4  ;;  %s17_s10 = int_to_ptr.vmem [resolvable:$true] %s16_s10 }
   0x3   :  { %s1103_s11 = scalar_lea.vmem %s17_s10, 2048  ;;  %p1108_p1 = scmp.lt.s32.totalorder %s17_s10, %s17_s10 }
   0x4   :  { %p1104_p0 = scmp.ne.s32.totalorder %s17_s10, %s1103_s11  ;;  %p1109_p2 = scmp.lt.s32.totalorder %s1103_s11, %s1103_s11 }
   0x6   :  { %p1110_p3 = por %p1109_p2, %p1108_p1 }
   0x8   :  { %p1111_p4 = pnand %p1110_p3, %p1104_p0 }
   0xa   :  { %1114 = shalt.err (!%p1111_p4)
}
   0xb   :  { %s1140_s12 = smov 128   ;;  %s1141_s13 = smov 8  }
   0xc   :  { %22 = dma.hbm_to_vmem [thread:$0]  %s1545_s1, 2048, %s17_s10, [#allocation3], %s1140_s12, %s1140_s12, %s1141_s13  }
   0xd   :  { %1135 = dma.done.wait [#allocation3], 2048  }
   0xe   :  { %1136 = vsyncadd [#allocation3], 4294965248  ;;  %v1142_v0 = vmov 0   ;;  %v26_v1 = vld [vmem:[%s1544_s0] sm:$0xff]  ;;  %v27_v2 = vld [vmem:[%s1544_s0 + $0x8] sm:$0xff]  ;;  %s1145_s0 = smov [#allocation5]  }
   0xf   :  { %1094 = vset.pattern.permute.xlu0 %v1142_v0  ;;  %v57_v3 = vld [vmem:[#allocation2 + $0x78] sm:$0xff]  ;;  %v56_v5 = vld [vmem:[#allocation2 + $0x70] sm:$0xff]  ;;  %v55_v6 = vld [vmem:[#allocation2 + $0x68] sm:$0xff]  ;;  %s749_s1 = sshll.u32 %s1145_s0, 4  ;;  %s750_s1 = int_to_ptr.vmem [resolvable:$true] %s749_s1 }
  0x10   :  { %31 = vperm.xlu0 %1094, %v26_v1   ;;  %v1173_v4 = vand.u32 4294901760, %v57_v3  ;;  %v54_v7 = vld [vmem:[#allocation2 + $0x60] sm:$0xff]  ;;  %v1175_v8 = vand.u32 4294901760, %v56_v5  ;;  %v1177_v9 = vand.u32 4294901760, %v55_v6  ;;  %v53_v11 = vld [vmem:[#allocation2 + $0x58] sm:$0xff]  ;;  %v52_v12 = vld [vmem:[#allocation2 + $0x50] sm:$0xff]  ;;  %p1120_p6 = scmp.lt.s32.totalorder %s750_s1, %s750_s1 }
  0x11   :  { %v1179_v10 = vand.u32 4294901760, %v54_v7  ;;  %v51_v13 = vld [vmem:[#allocation2 + $0x48] sm:$0xff]  ;;  %v1184_v15 = vand.u32 4294901760, %v53_v11  ;;  %v1187_v16 = vand.u32 4294901760, %v52_v12  ;;  %v50_v18 = vld [vmem:[#allocation2 + $0x40] sm:$0xff]  ;;  %v49_v35 = vld [vmem:[#allocation2 + $0x38] sm:$0xff] }
  0x12   :  { %v1182_v14 = vsub.f32 %v57_v3, %v1173_v4  ;;  %877 = vmatprep.subr.mxu0 %v1173_v4  ;;  %v1189_v17 = vand.u32 4294901760, %v51_v13  ;;  %v1192_v19 = vsub.f32 %v56_v5, %v1175_v8  ;;  %v1195_v20 = vsub.f32 %v55_v6, %v1177_v9  ;;  %v48_v39 = vld [vmem:[#allocation2 + $0x30] sm:$0xff]  ;;  %v47_v40 = vld [vmem:[#allocation2 + $0x28] sm:$0xff]  ;;  %v46_v43 = vld [vmem:[#allocation2 + $0x20] sm:$0xff]  ;;  %s1115_s20 = scalar_lea.vmem %s750_s1, 256 }
  0x13   :  { %v1198_v21 = vsub.f32 %v54_v7, %v1179_v10  ;;  %878 = vmatpush3.msra.mxu0 %v1173_v4  ;;  %v1201_v22 = vand.u32 4294901760, %v50_v18  ;;  %v1207_v24 = vsub.f32 %v53_v11, %v1184_v15  ;;  %v1210_v25 = vsub.f32 %v52_v12, %v1187_v16  ;;  %v45_v50 = vld [vmem:[#allocation2 + $0x18] sm:$0xff]  ;;  %v44_v57 = vld [vmem:[#allocation2 + $0x10] sm:$0xff]  ;;  %v43_v63 = vld [vmem:[#allocation2 + $0x8] sm:$0xff]  ;;  %p1116_p5 = scmp.ne.s32.totalorder %s750_s1, %s1115_s20  ;;  %p1121_p7 = scmp.lt.s32.totalorder %s1115_s20, %s1115_s20 }
  0x14   :  { %34 = vperm.xlu0 %1094, %v27_v2   ;;  %v1204_v23 = vand.u32 4294901760, %v1182_v14  ;;  %879 = vmatprep.subr.mxu0 %v1175_v8  ;;  %v1214_v26 = vand.u32 4294901760, %v1192_v19  ;;  %v1217_v27 = vand.u32 4294901760, %v1195_v20  ;;  %v1224_v29 = vsub.f32 %v51_v13, %v1189_v17  ;;  %v42_v6 = vld [vmem:[#allocation2] sm:$0xff] }
  0x15   :  { %v1220_v28 = vand.u32 4294901760, %v1198_v21  ;;  %880 = vmatpush3.msra.mxu0 %v1175_v8  ;;  %v1229_v31 = vand.u32 4294901760, %v1207_v24  ;;  %v1238_v34 = vsub.f32 %v50_v18, %v1201_v22  ;;  %v1243_v38 = vand.u32 4294901760, %v1210_v25  ;;  %p1122_p8 = por %p1121_p7, %p1120_p6 }
  0x16   :  { %v163_v30 = vsub.f32 %v1182_v14, %v1204_v23  ;;  %881 = vmatprep.subr.mxu0 %v1177_v9  ;;  %v170_v32 = vsub.f32 %v1192_v19, %v1214_v26  ;;  %v177_v33 = vsub.f32 %v1195_v20, %v1217_v27  ;;  %v1247_v42 = vand.u32 4294901760, %v1224_v29 }
  0x17   :  { %882 = vmatpush3.msra.mxu0 %v1177_v9  ;;  %v184_v37 = vsub.f32 %v1198_v21, %v1220_v28  ;;  %v191_v45 = vsub.f32 %v1207_v24, %v1229_v31  ;;  %v1252_v46 = vand.u32 4294901760, %v49_v35  ;;  %v1256_v47 = vand.u32 4294901760, %v1238_v34  ;;  %p1123_p9 = pnand %p1122_p8, %p1116_p5 }
  0x18   :  { %v164_v36 = vand.u32 4294901760, %v163_v30  ;;  %883 = vmatprep.subr.mxu0 %v1179_v10  ;;  %v171_v41 = vand.u32 4294901760, %v170_v32  ;;  %v178_v44 = vand.u32 4294901760, %v177_v33  ;;  %v1259_v48 = vand.u32 4294901760, %v48_v39 }
  0x19   :  { %884 = vmatpush3.msra.mxu0 %v1179_v10  ;;  %v1261_v49 = vand.u32 4294901760, %v47_v40  ;;  %v185_v51 = vand.u32 4294901760, %v184_v37  ;;  %v198_v52 = vsub.f32 %v1210_v25, %v1243_v38  ;;  %v1266_v53 = vsub.f32 %v49_v35, %v1252_v46 }
  0x1a   :  { %912 = vmatprep.subr.mxu1 %v164_v36  ;;  %885 = vmatprep.subr.mxu0 %v1184_v15  ;;  %v1269_v54 = vand.u32 4294901760, %v46_v43  ;;  %v205_v55 = vsub.f32 %v1224_v29, %v1247_v42  ;;  %v1274_v56 = vsub.f32 %v48_v39, %v1259_v48  ;;  %v192_v58 = vand.u32 4294901760, %v191_v45 }
  0x1b   :  { %913 = vmatpush3.msra.mxu1 %v164_v36  ;;  %886 = vmatpush3.msra.mxu0 %v1184_v15  ;;  %v1278_v59 = vand.u32 4294901760, %v1266_v53  ;;  %v1281_v60 = vsub.f32 %v47_v40, %v1261_v49  ;;  %v1284_v61 = vand.u32 4294901760, %v45_v50  ;;  %v212_v62 = vsub.f32 %v1238_v34, %v1256_v47 }
  0x1c   :  { %914 = vmatprep.subr.mxu1 %v171_v41  ;;  %887 = vmatprep.subr.mxu0 %v1187_v16  ;;  %v199_v0 = vand.u32 4294901760, %v198_v52  ;;  %v1290_v1 = vand.u32 4294901760, %v1274_v56  ;;  %v1293_v2 = vsub.f32 %v46_v43, %v1269_v54  ;;  %v1296_v3 = vand.u32 4294901760, %v44_v57 }
  0x1d   :  { %915 = vmatpush3.msra.mxu1 %v171_v41  ;;  %888 = vmatpush3.msra.mxu0 %v1187_v16  ;;  %v206_v5 = vand.u32 4294901760, %v205_v55  ;;  %v219_v7 = vsub.f32 %v1266_v53, %v1278_v59  ;;  %v1302_v11 = vand.u32 4294901760, %v1281_v60  ;;  %v1305_v12 = vsub.f32 %v45_v50, %v1284_v61 }
  0x1e   :  { %916 = vmatprep.subr.mxu1 %v178_v44  ;;  %889 = vmatprep.subr.mxu0 %v1189_v17  ;;  %v1308_v13 = vand.u32 4294901760, %v43_v63  ;;  %v213_v18 = vand.u32 4294901760, %v212_v62  ;;  %v226_v30 = vsub.f32 %v1274_v56, %v1290_v1  ;;  %v1314_v32 = vand.u32 4294901760, %v1293_v2 }
  0x1f   :  { %917 = vmatpush3.msra.mxu1 %v178_v44  ;;  %890 = vmatpush3.msra.mxu0 %v1189_v17  ;;  %v1317_v33 = vsub.f32 %v44_v57, %v1296_v3  ;;  %v1320_v35 = vand.u32 4294901760, %v42_v6  ;;  %v220_v36 = vand.u32 4294901760, %v219_v7  ;;  %v233_v37 = vsub.f32 %v1281_v60, %v1302_v11 }
  0x20   :  { %918 = vmatprep.subr.mxu1 %v185_v51  ;;  %891 = vmatprep.subr.mxu0 %v1201_v22  ;;  %v1326_v39 = vand.u32 4294901760, %v1305_v12  ;;  %v1329_v40 = vsub.f32 %v43_v63, %v1308_v13  ;;  %v227_v41 = vand.u32 4294901760, %v226_v30  ;;  %v240_v43 = vsub.f32 %v1293_v2, %v1314_v32 }
  0x21   :  { %919 = vmatpush3.msra.mxu1 %v185_v51  ;;  %892 = vmatpush3.msra.mxu0 %v1201_v22  ;;  %v1336_v44 = vand.u32 4294901760, %v1317_v33  ;;  %v1339_v45 = vsub.f32 %v42_v6, %v1320_v35  ;;  %v234_v50 = vand.u32 4294901760, %v233_v37  ;;  %v1143_v37 = vmov 0.0  }
  0x22   :  { %920 = vmatprep.subr.mxu1 %v192_v58  ;;  %893 = vmatprep.subr.mxu0 %v1252_v46  ;;  %v247_v51 = vsub.f32 %v1305_v12, %v1326_v39  ;;  %v1346_v52 = vand.u32 4294901760, %v1329_v40  ;;  %v241_v55 = vand.u32 4294901760, %v240_v43  ;;  %v1144_v43 = vmov 1.0  }
  0x23   :  { %921 = vmatpush3.msra.mxu1 %v192_v58  ;;  %894 = vmatpush3.msra.mxu0 %v1252_v46  ;;  %v254_v57 = vsub.f32 %v1317_v33, %v1336_v44  ;;  %v1353_v58 = vand.u32 4294901760, %v1339_v45 }
  0x24   :  { %922 = vmatprep.subr.mxu1 %v199_v0  ;;  %895 = vmatprep.subr.mxu0 %v1259_v48  ;;  %v248_v62 = vand.u32 4294901760, %v247_v51  ;;  %v261_v63 = vsub.f32 %v1329_v40, %v1346_v52 }
  0x25   :  { %923 = vmatpush3.msra.mxu1 %v199_v0  ;;  %896 = vmatpush3.msra.mxu0 %v1259_v48  ;;  %v255_v0 = vand.u32 4294901760, %v254_v57 }
  0x26   :  { %924 = vmatprep.subr.mxu1 %v206_v5  ;;  %897 = vmatprep.subr.mxu0 %v1261_v49  ;;  %v262_v6 = vand.u32 4294901760, %v261_v63 }
  0x27   :  { %925 = vmatpush3.msra.mxu1 %v206_v5  ;;  %898 = vmatpush3.msra.mxu0 %v1261_v49  ;;  %v268_v5 = vsub.f32 %v1339_v45, %v1353_v58 }
  0x28   :  { %926 = vmatprep.subr.mxu1 %v213_v18  ;;  %899 = vmatprep.subr.mxu0 %v1269_v54 }
  0x29   :  { %927 = vmatpush3.msra.mxu1 %v213_v18  ;;  %900 = vmatpush3.msra.mxu0 %v1269_v54  ;;  %v269_v7 = vand.u32 4294901760, %v268_v5  ;;  %v28_v18 = vlaneseq }
  0x2a   :  { %928 = vmatprep.subr.mxu1 %v220_v36  ;;  %901 = vmatprep.subr.mxu0 %v1284_v61 }
  0x2b   :  { %929 = vmatpush3.msra.mxu1 %v220_v36  ;;  %902 = vmatpush3.msra.mxu0 %v1284_v61  ;;  %v1367_v30 = vand.u32 127, %v28_v18 }
  0x2c   :  { %930 = vmatprep.subr.mxu1 %v227_v41  ;;  %903 = vmatprep.subr.mxu0 %v1296_v3 }
  0x2d   :  { %931 = vmatpush3.msra.mxu1 %v227_v41  ;;  %904 = vmatpush3.msra.mxu0 %v1296_v3 }
  0x2e   :  { %932 = vmatprep.subr.mxu1 %v234_v50  ;;  %905 = vmatprep.subr.mxu0 %v1308_v13 }
  0x2f   :  { %933 = vmatpush3.msra.mxu1 %v234_v50  ;;  %906 = vmatpush3.msra.mxu0 %v1308_v13 }
  0x30   :  { %934 = vmatprep.subr.mxu1 %v241_v55  ;;  %907 = vmatprep.subr.mxu0 %v1320_v35 }
  0x31   :  { %935 = vmatpush3.msra.mxu1 %v241_v55  ;;  %908 = vmatpush3.msra.mxu0 %v1320_v35 }
  0x32   :  { %936 = vmatprep.subr.mxu1 %v248_v62  ;;  %947 = vmatprep.subr.mxu0 %v1182_v14 }
  0x33   :  { %937 = vmatpush3.msra.mxu1 %v248_v62 }
  0x34   :  { %938 = vmatprep.subr.mxu1 %v255_v0 }
  0x35   :  { %939 = vmatpush3.msra.mxu1 %v255_v0 }
  0x36   :  { %940 = vmatprep.subr.mxu1 %v262_v6 }
  0x37   :  { %941 = vmatpush3.msra.mxu1 %v262_v6 }
  0x38   :  { %942 = vmatprep.subr.mxu1 %v269_v7 }
  0x39   :  { %943 = vmatpush3.msra.mxu1 %v269_v7 }
  0x3a   :  { %982 = vmatprep.subr.mxu1 %v1173_v4 }
  0x8b   :  { %v1369_v36 = vpop.permute.xlu0 %31 }
  0x8c   :  { %vm36_vm0 = vcmp.eq.s32.totalorder %v1369_v36, %v1367_v30 }
  0x8d   :  { %v761_v41 = vsel %vm36_vm0, 1.0, %v1143_v37  ;;  %944 = vmatprep.mubr.msk.f32.mxu1 %vm36_vm0, %v1144_v43 }
  0x8e   :  { %v140_v50 = vsub.f32 %v761_v41, %v761_v41 }
  0x8f   :  { %v1380_v51 = vpop.permute.xlu0 %34 }
  0x90   :  { %vm37_vm1 = vcmp.eq.s32.totalorder %v1380_v51, %v1367_v30  ;;  %v141_v55 = vand.u32 4294901760, %v140_v50 }
  0x91   :  { %v762_v57 = vsel %vm37_vm1, 1.0, %v1143_v37  ;;  %945 = vmatmul.mubr.msk.f32.vlgmr.msra.gmra.mxu1 %vm37_vm1, %v1144_v43 }
  0x92   :  { %v1391_v62 = vsub.f32 %v762_v57, %v762_v57  ;;  %983 = vmatpush3.msra.mxu1 %v1173_v4  ;;  %1014 = vmatprep.mubr.f32.mxu1 %v141_v55  ;;  %v142_v63 = vsub.f32 %v140_v50, %v141_v55 }
  0x93   :  { %984 = vmatprep.subr.mxu1 %v1175_v8 }
  0x94   :  { %985 = vmatpush3.msra.mxu1 %v1175_v8  ;;  %v143_v0 = vand.u32 4294901760, %v142_v63  ;;  %v151_v5 = vand.u32 4294901760, %v1391_v62 }
  0x95   :  { %986 = vmatprep.subr.mxu1 %v1177_v9 }
  0x96   :  { %987 = vmatpush3.msra.mxu1 %v1177_v9  ;;  %909 = vmatprep.mubr.f32.mxu0 %v143_v0  ;;  %v152_v6 = vsub.f32 %v1391_v62, %v151_v5 }
  0x97   :  { %988 = vmatprep.subr.mxu1 %v1179_v10 }
  0x98   :  { %989 = vmatpush3.msra.mxu1 %v1179_v10  ;;  %v153_v7 = vand.u32 4294901760, %v152_v6 }
  0x99   :  { %990 = vmatprep.subr.mxu1 %v1184_v15 }
  0x9a   :  { %991 = vmatpush3.msra.mxu1 %v1184_v15  ;;  %910 = vmatmul.mubr.f32.vlgmr.msra.gmra.mxu0 %v153_v7 }
  0x9b   :  { %948 = vmatpush3.msra.mxu0 %v1182_v14  ;;  %992 = vmatprep.subr.mxu1 %v1187_v16 }
  0x9c   :  { %949 = vmatprep.subr.mxu0 %v1192_v19  ;;  %979 = vmatprep.mubr.f32.mxu0 %v140_v50 }
  0x9d   :  { %993 = vmatpush3.msra.mxu1 %v1187_v16  ;;  %950 = vmatpush3.msra.mxu0 %v1192_v19 }
  0x9e   :  { %994 = vmatprep.subr.mxu1 %v1189_v17  ;;  %951 = vmatprep.subr.mxu0 %v1195_v20 }
  0x9f   :  { %995 = vmatpush3.msra.mxu1 %v1189_v17  ;;  %952 = vmatpush3.msra.mxu0 %v1195_v20 }
  0xa0   :  { %996 = vmatprep.subr.mxu1 %v1201_v22  ;;  %953 = vmatprep.subr.mxu0 %v1198_v21 }
  0xa1   :  { %997 = vmatpush3.msra.mxu1 %v1201_v22  ;;  %954 = vmatpush3.msra.mxu0 %v1198_v21 }
  0xa2   :  { %998 = vmatprep.subr.mxu1 %v1252_v46  ;;  %955 = vmatprep.subr.mxu0 %v1207_v24 }
  0xa3   :  { %999 = vmatpush3.msra.mxu1 %v1252_v46  ;;  %956 = vmatpush3.msra.mxu0 %v1207_v24 }
  0xa4   :  { %1000 = vmatprep.subr.mxu1 %v1259_v48  ;;  %957 = vmatprep.subr.mxu0 %v1210_v25 }
  0xa5   :  { %1001 = vmatpush3.msra.mxu1 %v1259_v48  ;;  %958 = vmatpush3.msra.mxu0 %v1210_v25 }
  0xa6   :  { %1002 = vmatprep.subr.mxu1 %v1261_v49  ;;  %959 = vmatprep.subr.mxu0 %v1224_v29 }
  0xa7   :  { %1003 = vmatpush3.msra.mxu1 %v1261_v49  ;;  %960 = vmatpush3.msra.mxu0 %v1224_v29 }
  0xa8   :  { %1004 = vmatprep.subr.mxu1 %v1269_v54  ;;  %961 = vmatprep.subr.mxu0 %v1238_v34 }
  0xa9   :  { %1005 = vmatpush3.msra.mxu1 %v1269_v54  ;;  %962 = vmatpush3.msra.mxu0 %v1238_v34 }
  0xaa   :  { %1006 = vmatprep.subr.mxu1 %v1284_v61  ;;  %963 = vmatprep.subr.mxu0 %v1266_v53 }
  0xab   :  { %1007 = vmatpush3.msra.mxu1 %v1284_v61  ;;  %964 = vmatpush3.msra.mxu0 %v1266_v53 }
  0xac   :  { %1008 = vmatprep.subr.mxu1 %v1296_v3  ;;  %965 = vmatprep.subr.mxu0 %v1274_v56 }
  0xad   :  { %1009 = vmatpush3.msra.mxu1 %v1296_v3  ;;  %966 = vmatpush3.msra.mxu0 %v1274_v56 }
  0xae   :  { %1010 = vmatprep.subr.mxu1 %v1308_v13  ;;  %967 = vmatprep.subr.mxu0 %v1281_v60 }
  0xaf   :  { %1011 = vmatpush3.msra.mxu1 %v1308_v13  ;;  %968 = vmatpush3.msra.mxu0 %v1281_v60 }
  0xb0   :  { %1012 = vmatprep.subr.mxu1 %v1320_v35  ;;  %969 = vmatprep.subr.mxu0 %v1293_v2 }
  0xb1   :  { %1013 = vmatpush3.msra.mxu1 %v1320_v35  ;;  %970 = vmatpush3.msra.mxu0 %v1293_v2 }
  0xb2   :  { %1015 = vmatmul.mubr.f32.vlgmr.msra.gmra.mxu1 %v151_v5  ;;  %1052 = vmatprep.subr.mxu1 %v1173_v4 }
  0xb3   :  { %971 = vmatprep.subr.mxu0 %v1305_v12  ;;  %1053 = vmatpush3.msra.mxu1 %v1173_v4 }
  0xb4   :  { %1084 = vmatprep.mubr.msk.f32.mxu1 %vm36_vm0, %v1144_v43  ;;  %972 = vmatpush3.msra.mxu0 %v1305_v12 }
  0xb5   :  { %1054 = vmatprep.subr.mxu1 %v1175_v8  ;;  %973 = vmatprep.subr.mxu0 %v1317_v33 }
  0xb6   :  { %1055 = vmatpush3.msra.mxu1 %v1175_v8  ;;  %974 = vmatpush3.msra.mxu0 %v1317_v33 }
  0xb7   :  { %1056 = vmatprep.subr.mxu1 %v1177_v9  ;;  %975 = vmatprep.subr.mxu0 %v1329_v40 }
  0xb8   :  { %1057 = vmatpush3.msra.mxu1 %v1177_v9  ;;  %976 = vmatpush3.msra.mxu0 %v1329_v40 }
  0xb9   :  { %1058 = vmatprep.subr.mxu1 %v1179_v10  ;;  %977 = vmatprep.subr.mxu0 %v1339_v45 }
  0xba   :  { %1059 = vmatpush3.msra.mxu1 %v1179_v10  ;;  %978 = vmatpush3.msra.mxu0 %v1339_v45 }
  0xbb   :  { %1060 = vmatprep.subr.mxu1 %v1184_v15  ;;  %980 = vmatmul.mubr.f32.vlgmr.msra.gmra.mxu0 %v1391_v62 }
  0xbc   :  { %1017 = vmatprep.subr.mxu0 %v1204_v23  ;;  %1061 = vmatpush3.msra.mxu1 %v1184_v15 }
  0xbd   :  { %1018 = vmatpush3.msra.mxu0 %v1204_v23  ;;  %1049 = vmatprep.mubr.msk.f32.mxu0 %vm36_vm0, %v1144_v43 }
  0xbe   :  { %1062 = vmatprep.subr.mxu1 %v1187_v16  ;;  %1019 = vmatprep.subr.mxu0 %v1214_v26 }
  0xbf   :  { %1063 = vmatpush3.msra.mxu1 %v1187_v16  ;;  %1020 = vmatpush3.msra.mxu0 %v1214_v26 }
  0xc0   :  { %1064 = vmatprep.subr.mxu1 %v1189_v17  ;;  %1021 = vmatprep.subr.mxu0 %v1217_v27 }
  0xc1   :  { %1065 = vmatpush3.msra.mxu1 %v1189_v17  ;;  %1022 = vmatpush3.msra.mxu0 %v1217_v27 }
  0xc2   :  { %1066 = vmatprep.subr.mxu1 %v1201_v22  ;;  %1023 = vmatprep.subr.mxu0 %v1220_v28 }
  0xc3   :  { %1067 = vmatpush3.msra.mxu1 %v1201_v22  ;;  %1024 = vmatpush3.msra.mxu0 %v1220_v28 }
  0xc4   :  { %1068 = vmatprep.subr.mxu1 %v1252_v46  ;;  %1025 = vmatprep.subr.mxu0 %v1229_v31 }
  0xc5   :  { %1069 = vmatpush3.msra.mxu1 %v1252_v46  ;;  %1026 = vmatpush3.msra.mxu0 %v1229_v31 }
  0xc6   :  { %1070 = vmatprep.subr.mxu1 %v1259_v48  ;;  %1027 = vmatprep.subr.mxu0 %v1243_v38 }
  0xc7   :  { %1071 = vmatpush3.msra.mxu1 %v1259_v48  ;;  %1028 = vmatpush3.msra.mxu0 %v1243_v38 }
  0xc8   :  { %1072 = vmatprep.subr.mxu1 %v1261_v49  ;;  %1029 = vmatprep.subr.mxu0 %v1247_v42 }
  0xc9   :  { %1073 = vmatpush3.msra.mxu1 %v1261_v49  ;;  %1030 = vmatpush3.msra.mxu0 %v1247_v42 }
  0xca   :  { %1074 = vmatprep.subr.mxu1 %v1269_v54  ;;  %1031 = vmatprep.subr.mxu0 %v1256_v47 }
  0xcb   :  { %1075 = vmatpush3.msra.mxu1 %v1269_v54  ;;  %1032 = vmatpush3.msra.mxu0 %v1256_v47 }
  0xcc   :  { %1076 = vmatprep.subr.mxu1 %v1284_v61  ;;  %1033 = vmatprep.subr.mxu0 %v1278_v59 }
  0xcd   :  { %1077 = vmatpush3.msra.mxu1 %v1284_v61  ;;  %1034 = vmatpush3.msra.mxu0 %v1278_v59 }
  0xce   :  { %1078 = vmatprep.subr.mxu1 %v1296_v3  ;;  %1035 = vmatprep.subr.mxu0 %v1290_v1 }
  0xcf   :  { %1079 = vmatpush3.msra.mxu1 %v1296_v3  ;;  %1036 = vmatpush3.msra.mxu0 %v1290_v1 }
  0xd0   :  { %1080 = vmatprep.subr.mxu1 %v1308_v13  ;;  %1037 = vmatprep.subr.mxu0 %v1302_v11 }
  0xd1   :  { %1081 = vmatpush3.msra.mxu1 %v1308_v13  ;;  %1038 = vmatpush3.msra.mxu0 %v1302_v11 }
  0xd2   :  { %1082 = vmatprep.subr.mxu1 %v1320_v35  ;;  %1039 = vmatprep.subr.mxu0 %v1314_v32 }
  0xd3   :  { %1083 = vmatpush3.msra.mxu1 %v1320_v35  ;;  %1040 = vmatpush3.msra.mxu0 %v1314_v32 }
  0xd4   :  { %1085 = vmatmul.mubr.msk.f32.vlgmr.msra.gmra.mxu1 %vm37_vm1, %v1144_v43  ;;  %1041 = vmatprep.subr.mxu0 %v1326_v39 }
  0xd5   :  { %1042 = vmatpush3.msra.mxu0 %v1326_v39 }
  0xd6   :  { %1043 = vmatprep.subr.mxu0 %v1336_v44 }
  0xd7   :  { %1044 = vmatpush3.msra.mxu0 %v1336_v44 }
  0xd8   :  { %1045 = vmatprep.subr.mxu0 %v1346_v52 }
  0xd9   :  { %1046 = vmatpush3.msra.mxu0 %v1346_v52 }
  0xda   :  { %1047 = vmatprep.subr.mxu0 %v1353_v58 }
  0xdb   :  { %1048 = vmatpush3.msra.mxu0 %v1353_v58 }
  0xdc   :  { %1050 = vmatmul.mubr.msk.f32.vlgmr.msra.gmra.mxu0 %vm37_vm1, %v1144_v43 }
 0x151   :  { %v946_v8 = vpop.f32.mrf.mxu1 }
 0x153   :  { %v306_v14 = vpop.f32.mrf.mxu1 }
 0x15a   :  { %v911_v4 = vpop.f32.mrf.mxu0 }
 0x15b   :  { %v313_v15 = vadd.f32 %v946_v8, %v911_v4 }
 0x15c   :  { %v145_v9 = vpop.f32.mrf.mxu0 }
 0x15d   :  { %v307_v19 = vadd.f32 %v306_v14, %v145_v9 }
 0x172   :  { %v1016_v16 = vpop.f32.mrf.mxu1 }
 0x174   :  { %v512_v22 = vpop.f32.mrf.mxu1 }
 0x17b   :  { %v981_v10 = vpop.f32.mrf.mxu0 }
 0x17c   :  { %v424_v20 = vadd.f32 %v981_v10, %v313_v15 }
 0x17d   :  { %v416_v17 = vpop.f32.mrf.mxu0 }
 0x17e   :  { %v417_v21 = vadd.f32 %v416_v17, %v307_v19  ;;  %v521_v23 = vadd.f32 %v1016_v16, %v424_v20 }
 0x180   :  { %v513_v27 = vadd.f32 %v512_v22, %v417_v21 }
 0x194   :  { %v1086_v24 = vpop.f32.mrf.mxu1 }
 0x196   :  { %v732_v34 = vpop.f32.mrf.mxu1 }
 0x19c   :  { %v1051_v25 = vpop.f32.mrf.mxu0 }
 0x19d   :  { %v646_v26 = vadd.f32 %v1051_v25, %v521_v23 }
 0x19e   :  { %v639_v28 = vpop.f32.mrf.mxu0 }
 0x19f   :  { %v739_v29 = vadd.f32 %v1086_v24, %v646_v26  ;;  %v640_v31 = vadd.f32 %v639_v28, %v513_v27 }
 0x1a1   :  { %743 = vst [vmem:[#allocation5 + $0x8] sm:$0xff] %v739_v29  ;;  %v733_v38 = vadd.f32 %v732_v34, %v640_v31 }
 0x1a3   :  { %742 = vst [vmem:[#allocation5] sm:$0xff] %v733_v38 }
 0x1a4   :  { %1126 = shalt.err (!%p1123_p9)
}
 0x1a5   :  { %755 = dma.vmem_to_hbm [thread:$0]  %s750_s1, 256, %s1546_s2, [#allocation4], %s1140_s12, %s1140_s12, %s1141_s13  }
 0x1a6   :  { %1137 = dma.done.wait [#allocation4], 256  }
 0x1a7   :  { %1138 = vsyncadd [#allocation4], 4294967040 }
 0x1a8   :  { %759 = vsyncpa [#allocation3], 1 }
 0x1a9   :  { %760 = vsyncpa [#allocation4], 1 }

</bundles_post_ra>
